<compile_context>
chip_gen: v5e
topology: v5e:2x2
jax: 0.10.0
libtpu: 0.0.40
codegen_flags: <defaults>
</compile_context>

<pallas_src>
import jax
import jax.numpy as jnp
from jax.experimental import pallas as pl
from jax.experimental.pallas import tpu as pltpu


def _round_up(x, m):
    return ((x + m - 1) // m) * m


def _pick_pixel_tile(n_pixel):
    # Prefer lane-dense tiles that divide n_pixel; fall back to full width.
    for t in (512, 256, 128):
        if n_pixel % t == 0:
            return t
    return n_pixel


def _linear_projection_kernel(x_ref, pt_ref, p_ref, o_ref, y_ref):
    """Two-phase tiled kernel.

    Grid = (batch_tiles, 2 phases, pixel_tiles).
      phase 0: y_ref (TB, n_sample) f32  +=  x[:, k] @ P^T[k, :]
      phase 1: o[:, k] = y @ P[:, k]
    """
    ph = pl.program_id(1)
    k = pl.program_id(2)

    @pl.when((ph == 0) & (k == 0))
    def _():
        y_ref[...] = jnp.zeros_like(y_ref)

    @pl.when(ph == 0)
    def _():
        y_ref[...] += jnp.dot(
            x_ref[...], pt_ref[...], preferred_element_type=jnp.float32
        )

    @pl.when(ph == 1)
    def _():
        o_ref[...] = jnp.dot(
            y_ref[...].astype(p_ref.dtype),
            p_ref[...],
            preferred_element_type=jnp.float32,
        ).astype(o_ref.dtype)


def prepare_projection_matrix(proj_mtx, im_size):
    """One-time prep (constant across calls): permute P's columns to the natural
    (C, H, W) flatten order and pre-materialize bf16 P and P^T layouts so the
    per-call path has no activation transposes and no in-kernel transposes."""
    C, H, W = im_size
    n_sample, n_pixel = proj_mtx.shape
    p_nat = jnp.transpose(
        proj_mtx.reshape(n_sample, C, W, H), (0, 1, 3, 2)
    ).reshape(n_sample, n_pixel)
    p_bf16 = p_nat.astype(jnp.bfloat16)          # (n_sample, n_pixel)
    pT_bf16 = jnp.transpose(p_nat).astype(jnp.bfloat16)  # (n_pixel, n_sample)
    return p_bf16, pT_bf16


def linear_projection(x, p_bf16, pT_bf16, im_size, *, batch_tile=128):
    """JAX/Pallas equivalent of LinearProjection.forward.

    x       : (B, C, H, W) float32
    p_bf16  : (n_sample, n_pixel) bf16, columns pre-permuted (prepare_projection_matrix)
    pT_bf16 : (n_pixel, n_sample) bf16, same permutation, transposed
    returns : (B, C, H, W) float32
    """
    B = x.shape[0]
    C, H, W = im_size
    n_pixel = C * H * W
    n_sample = p_bf16.shape[0]

    # Natural-order flatten — no transpose needed (P columns were pre-permuted).
    x_flat = x.reshape(B, n_pixel).astype(jnp.bfloat16)

    # Batch tiling: multiple of 16 (bf16 sublane pack), capped at 128 so the MXU
    # M-tile is full on all generations. Pad batch with zero rows if needed.
    # (At B=2 this workload is overhead-bound regardless — batch more images per
    # call when throughput matters.)
    TB = min(batch_tile, _round_up(B, 16))
    B_pad = _round_up(B, TB)
    if B_pad != B:
        x_flat = jnp.pad(x_flat, ((0, B_pad - B), (0, 0)))
    nb = B_pad // TB

    TK = _pick_pixel_tile(n_pixel)
    nk = n_pixel // TK

    # VMEM budget: double-buffered x/pT/p/out tiles + f32 y scratch, with headroom.
    step_bytes = 2 * (TB * TK * 2 + TK * n_sample * 2 + n_sample * TK * 2
                      + TB * TK * 4) + 4 * TB * n_sample
    vmem_limit = int(min(32 * 1024 * 1024, max(4 * step_bytes, 16 * 1024 * 1024)))

    recon_flat = pl.pallas_call(
        _linear_projection_kernel,
        out_shape=jax.ShapeDtypeStruct((B_pad, n_pixel), jnp.float32),
        grid_spec=pltpu.PrefetchScalarGridSpec(
            num_scalar_prefetch=0,
            grid=(nb, 2, nk),
            in_specs=[
                # x tile: walks k in phase 0, held at last k-tile in phase 1 (no re-DMA).
                pl.BlockSpec(
                    (TB, TK),
                    lambda i, ph, k: (i, (1 - ph) * k + ph * (nk - 1)),
                ),
                # P^T tile: walks k in phase 0, held in phase 1.
                pl.BlockSpec(
                    (TK, n_sample),
                    lambda i, ph, k: ((1 - ph) * k + ph * (nk - 1), 0),
                ),
                # P tile: held at k=0 in phase 0, walks k in phase 1.
                pl.BlockSpec(
                    (n_sample, TK),
                    lambda i, ph, k: (0, ph * k),
                ),
            ],
            # Output tile: held at (i, 0) during phase 0 (not written), walks k in
            # phase 1 — lane-dense (TK >= 128) stores, no block revisited after leaving.
            out_specs=pl.BlockSpec((TB, TK), lambda i, ph, k: (i, ph * k)),
            scratch_shapes=[pltpu.VMEM((TB, n_sample), jnp.float32)],
        ),
        compiler_params=pltpu.CompilerParams(
            dimension_semantics=("parallel", "arbitrary", "arbitrary"),
            vmem_limit_bytes=vmem_limit,
        ),
    )(x_flat, pT_bf16, p_bf16)

    return recon_flat[:B].reshape(B, C, H, W)


def make_orthogonal_projection_matrix(key, n_sample, n_pixel):
    """Deterministic semi-orthogonal (n_sample, n_pixel) matrix with orthonormal
    rows, standing in for torch's householder-parametrized orthogonal linear."""
    # TODO(synk): torch's householder orthogonal parametrization is parameter
    # construction, not forward compute; a QR-derived semi-orthogonal matrix is
    # used as its stand-in here.
    a = jax.random.normal(key, (n_pixel, n_sample), dtype=jnp.float32)
    q, _ = jnp.linalg.qr(a)          # (n_pixel, n_sample), orthonormal columns
    return q.T                       # (n_sample, n_pixel), orthonormal rows


if __name__ == "__main__":
    key = jax.random.PRNGKey(0)
    k_x, k_p = jax.random.split(key)

    B = 2
    im_size = (4, 16, 16)            # (C, H, W)
    C, H, W = im_size
    n_pixel = C * H * W              # 1024
    n_sample = 64

    x = jax.random.normal(k_x, (B,) + im_size, dtype=jnp.float32)
    proj_mtx = make_orthogonal_projection_matrix(k_p, n_sample, n_pixel)

    p_bf16, pT_bf16 = prepare_projection_matrix(proj_mtx, im_size)
    out = linear_projection(x, p_bf16, pT_bf16, im_size)
    out = jax.block_until_ready(out)
    assert out.shape == (B,) + im_size

    # Reference 1: exact PyTorch forward semantics in f32 (loose tol for bf16 MXU).
    x_flat_t = jnp.transpose(x, (0, 1, 3, 2)).reshape(B, n_pixel)
    ref_flat = x_flat_t @ proj_mtx.T @ proj_mtx
    ref = jnp.transpose(ref_flat.reshape(B, C, W, H), (0, 1, 3, 2))
    assert jnp.allclose(out, ref, atol=5e-2, rtol=5e-2)

    # Reference 2: same bf16/f32-accumulate pipeline in plain XLA (tight tol —
    # validates the tiling / indexing / permutation independent of bf16 rounding).
    x_nat_bf16 = x.reshape(B, n_pixel).astype(jnp.bfloat16)
    y_bf = jnp.dot(x_nat_bf16, pT_bf16, preferred_element_type=jnp.float32
                   ).astype(jnp.bfloat16)
    ref_bf = jnp.dot(y_bf, p_bf16, preferred_element_type=jnp.float32
                     ).reshape(B, C, H, W)
    assert jnp.allclose(out, ref_bf, atol=5e-3, rtol=5e-3)

    print("KERNEL_OK")
</pallas_src>

<mosaic_0001>
module attributes {stable_mosaic.version = 11 : i64} {
  func.func @_linear_projection_kernel(%arg0: i32, %arg1: i32, %arg2: i32, %arg3: memref<16x512xbf16, #tpu.memory_space<vmem>>, %arg4: memref<512x64xbf16, #tpu.memory_space<vmem>>, %arg5: memref<64x512xbf16, #tpu.memory_space<vmem>>, %arg6: memref<16x512xf32, #tpu.memory_space<vmem>>, %arg7: memref<16x64xf32, #tpu.memory_space<vmem>>) attributes {dimension_semantics = [#tpu.dimension_semantics<parallel>, #tpu.dimension_semantics<arbitrary>, #tpu.dimension_semantics<arbitrary>], iteration_bounds = array<i64: 1, 2, 2>, scalar_prefetch = 0 : i64, scratch_operands = 1 : i64, tpu.core_type = #tpu.core_type<tc>, window_params = [{transform_indices = @transform_0, window_bounds = array<i64: 16, 512>}, {transform_indices = @transform_1, window_bounds = array<i64: 512, 64>}, {transform_indices = @transform_2, window_bounds = array<i64: 64, 512>}, {transform_indices = @transform_3, window_bounds = array<i64: 16, 512>}]} {
    %c0_i32 = arith.constant 0 : i32
    %0 = arith.cmpi eq, %arg1, %c0_i32 : i32
    %c0_i32_0 = arith.constant 0 : i32
    %1 = arith.cmpi eq, %arg2, %c0_i32_0 : i32
    %2 = arith.andi %0, %1 : i1
    %3 = arith.extui %2 : i1 to i32
    %c0_i32_1 = arith.constant 0 : i32
    %4 = arith.cmpi ne, %3, %c0_i32_1 : i32
    scf.if %4 {
      %cst = arith.constant 0.000000e+00 : f32
      %11 = vector.broadcast %cst : f32 to vector<16x64xf32>
      %c0 = arith.constant 0 : index
      %c0_5 = arith.constant 0 : index
      %12 = vector.load %arg7[%c0, %c0_5] : memref<16x64xf32, #tpu.memory_space<vmem>>, vector<16x64xf32>
      tpu.vector_store %arg7[%c0, %c0_5], %11 {strides = array<i32>} : memref<16x64xf32, #tpu.memory_space<vmem>>, vector<16x64xf32>,
    } else {
    }
    %c0_i32_2 = arith.constant 0 : i32
    %5 = arith.cmpi eq, %arg1, %c0_i32_2 : i32
    %6 = arith.extui %5 : i1 to i32
    %c0_i32_3 = arith.constant 0 : i32
    %7 = arith.cmpi ne, %6, %c0_i32_3 : i32
    scf.if %7 {
      %c0 = arith.constant 0 : index
      %c0_5 = arith.constant 0 : index
      %11 = vector.load %arg7[%c0, %c0_5] : memref<16x64xf32, #tpu.memory_space<vmem>>, vector<16x64xf32>
      %c0_6 = arith.constant 0 : index
      %c0_7 = arith.constant 0 : index
      %12 = vector.load %arg3[%c0_6, %c0_7] : memref<16x512xbf16, #tpu.memory_space<vmem>>, vector<16x512xbf16>
      %c0_8 = arith.constant 0 : index
      %c0_9 = arith.constant 0 : index
      %13 = vector.load %arg4[%c0_8, %c0_9] : memref<512x64xbf16, #tpu.memory_space<vmem>>, vector<512x64xbf16>
      %cst = arith.constant dense<0.000000e+00> : vector<16x64xf32>
      %14 = tpu.matmul %12, %13, %cst {dimension_numbers = #tpu.dot_dimension_numbers<[1], [0], [0], [1], [0, 0, 1, 1], [], []>} : vector<16x512xbf16>, vector<512x64xbf16>, vector<16x64xf32> -> vector<16x64xf32>
      %15 = arith.addf %11, %14 : vector<16x64xf32>
      %c0_10 = arith.constant 0 : index
      %c0_11 = arith.constant 0 : index
      %16 = vector.load %arg7[%c0_10, %c0_11] : memref<16x64xf32, #tpu.memory_space<vmem>>, vector<16x64xf32>
      tpu.vector_store %arg7[%c0_10, %c0_11], %15 {strides = array<i32>} : memref<16x64xf32, #tpu.memory_space<vmem>>, vector<16x64xf32>,
    } else {
    }
    %c1_i32 = arith.constant 1 : i32
    %8 = arith.cmpi eq, %arg1, %c1_i32 : i32
    %9 = arith.extui %8 : i1 to i32
    %c0_i32_4 = arith.constant 0 : i32
    %10 = arith.cmpi ne, %9, %c0_i32_4 : i32
    scf.if %10 {
      %c0 = arith.constant 0 : index
      %c0_5 = arith.constant 0 : index
      %11 = vector.load %arg7[%c0, %c0_5] : memref<16x64xf32, #tpu.memory_space<vmem>>, vector<16x64xf32>
      %12 = arith.truncf %11 : vector<16x64xf32> to vector<16x64xbf16>
      %c0_6 = arith.constant 0 : index
      %c0_7 = arith.constant 0 : index
      %13 = vector.load %arg5[%c0_6, %c0_7] : memref<64x512xbf16, #tpu.memory_space<vmem>>, vector<64x512xbf16>
      %cst = arith.constant dense<0.000000e+00> : vector<16x512xf32>
      %14 = tpu.matmul %12, %13, %cst {dimension_numbers = #tpu.dot_dimension_numbers<[1], [0], [0], [1], [0, 0, 1, 1], [], []>} : vector<16x64xbf16>, vector<64x512xbf16>, vector<16x512xf32> -> vector<16x512xf32>
      %c0_8 = arith.constant 0 : index
      %c0_9 = arith.constant 0 : index
      %15 = vector.load %arg6[%c0_8, %c0_9] : memref<16x512xf32, #tpu.memory_space<vmem>>, vector<16x512xf32>
      tpu.vector_store %arg6[%c0_8, %c0_9], %14 {strides = array<i32>} : memref<16x512xf32, #tpu.memory_space<vmem>>, vector<16x512xf32>,
    } else {
    }
    return
  }
  func.func @transform_0(%arg0: i32, %arg1: i32, %arg2: i32) -> (i32, i32) {
    %c1_i32 = arith.constant 1 : i32
    %0 = arith.subi %c1_i32, %arg1 : i32
    %1 = arith.muli %0, %arg2 : i32
    %c1_i32_0 = arith.constant 1 : i32
    %2 = arith.muli %arg1, %c1_i32_0 : i32
    %3 = arith.addi %1, %2 : i32
    %c0_i32 = arith.constant 0 : i32
    return %arg0, %3 : i32, i32
  }
  func.func @transform_1(%arg0: i32, %arg1: i32, %arg2: i32) -> (i32, i32) {
    %c1_i32 = arith.constant 1 : i32
    %0 = arith.subi %c1_i32, %arg1 : i32
    %1 = arith.muli %0, %arg2 : i32
    %c1_i32_0 = arith.constant 1 : i32
    %2 = arith.muli %arg1, %c1_i32_0 : i32
    %3 = arith.addi %1, %2 : i32
    %c0_i32 = arith.constant 0 : i32
    %c0_i32_1 = arith.constant 0 : i32
    return %3, %c0_i32 : i32, i32
  }
  func.func @transform_2(%arg0: i32, %arg1: i32, %arg2: i32) -> (i32, i32) {
    %0 = arith.muli %arg1, %arg2 : i32
    %c0_i32 = arith.constant 0 : i32
    %c0_i32_0 = arith.constant 0 : i32
    return %c0_i32, %0 : i32, i32
  }
  func.func @transform_3(%arg0: i32, %arg1: i32, %arg2: i32) -> (i32, i32) {
    %0 = arith.muli %arg1, %arg2 : i32
    %c0_i32 = arith.constant 0 : i32
    return %arg0, %0 : i32, i32
  }
}

</mosaic_0001>

<bundles_post_ra>
// kernel: tpu_custom_call.1
= control target key start
LH: loop header
LB: loop body
LE: loop exit
PB: predicated region body
PF: predicated region fallthrough
CT: control target
= control target key end

     0   :  { %s1839_s0 = inlined_call_operand.vmem [shape: bf16[16,1024], index: 0, kind: input, shape index: {}]   ;;  %s1840_s1 = inlined_call_operand.vmem [shape: bf16[1024,64], index: 1, kind: input, shape index: {}]   ;;  %s1841_s2 = inlined_call_operand.vmem [shape: bf16[64,1024], index: 2, kind: input, shape index: {}]   ;;  %s1842_s3 = inlined_call_operand.hbm [shape: f32[16,1024], index: 3, kind: output, shape index: {}]  }
   0x1   :  { %1845 = sst [smem:[#allocation10_spill]] %s1839_s0 }
   0x2   :  { %8 = vsyncpa [#allocation6], 0 }
   0x3   :  { %10 = vsyncpa [#allocation6 + $0x1], 0  ;;  %s1541_s12 = smov 0   ;;  %s1543_s13 = smov 0  }
   0x4   :  { %s1545_s14 = smov 0   ;;  %s1547_s15 = smov 0  }
   0x5   :  { %s1549_s16 = smov 0   ;;  %s1551_s17 = smov 0  }
   0x6   :  { %s1553_s18 = smov 0   ;;  %s1555_s19 = smov 0  }
   0x7   :  { %s1557_s20 = smov 0   ;;  %s1559_s21 = smov 0  }
   0x8 LB: > { %1846 = sst [smem:[#allocation8_spill]] %s1511_s20  ;;  %s1024_s22 = sadd.s32 4294967295, %s1515_s21   ;;  %s1515_s21 = sphi %s1559_s21, %s16_s21   ;;  %s1511_s20 = sphi %s1557_s20, %s1863_s20   ;;  %s1507_s19 = sphi %s1555_s19, %s1862_s19   ;;  %s1503_s18 = sphi %s1553_s18, %s1854_s18   ;;  %s1499_s17 = sphi %s1551_s17, %s1861_s17   ;;  %s1495_s16 = sphi %s1549_s16, %s1860_s16   ;;  %s1491_s15 = sphi %s1547_s15, %s1859_s15   ;;  %s1487_s14 = sphi %s1545_s14, %s1858_s14   ;;  %s1483_s13 = sphi %s1543_s13, %s1857_s13   ;;  %s1479_s12 = sphi %s1541_s12, %s1856_s12  }
   0x9   : > { %s28_s24 = sadd.s32 1, %s1507_s19  ;;  %s31_s25 = sadd.s32 1, %s1511_s20 }
   0xa   : > { %p29_p0 = scmp.ge.s32.totalorder %s28_s24, 2  ;;  %s39_s26 = ssub.s32 1, %s1511_s20 }
   0xb   : > { %s40_s27 = smul.u32 %s1507_s19, %s39_s26  ;;  %s50_s28 = sadd.s32 1, %s1495_s16 }
   0xc   : > { %s1865_s24 = smov (%p29_p0, %s28_s24), 0  ;;  %s1867_s25 = smov (!%p29_p0, %s31_s25), %s1511_s20 }
   0xd   : > { %1847 = sst [smem:[#allocation9_spill]] %s1865_s24  ;;  %s1602_s29 = sadd.s32 %s1511_s20, %s40_s27 }
   0xe   : > { %p57_p1 = scmp.ne.s32.totalorder %s1495_s16, %s1491_s15  ;;  %p33_p2 = scmp.ge.s32.totalorder %s1867_s25, 2 }
   0xf   : > { %p58_p3 = scmp.eq.s32.totalorder %s1515_s21, 0  ;;  %s1609_s30 = smul.u32 %s1507_s19, %s1511_s20 }
  0x10   : > { %s110_s4 = sadd.s32 1, %s1487_s14  ;;  %s1869_s25 = smov (%p33_p2, %s1867_s25), 0 }
  0x11   : > { %p1614_p4 = por %p58_p3, %p57_p1  ;;  %p117_p5 = scmp.ne.s32.totalorder %s1487_s14, %s1483_s13 }
  0x12   : > { %s42_s6 = ssub.s32 1, %s1869_s25  ;;  %s106_s7 = smul.u32 %s1869_s25, %s1865_s24 }
  0x13   : > { %s43_s8 = smul.u32 %s42_s6, %s1865_s24  ;;  %p1624_p6 = por %p117_p5, %p58_p3 }
  0x14   : > { %s107_s10 = ssub.s32 %s1609_s30, %s106_s7  ;;  %p151_p7 = scmp.eq.s32.totalorder %s1024_s22, 3 }
  0x15   : > { %s44_s11 = sadd.s32 %s43_s8, %s1869_s25  ;;  %p108_p8 = scmp.eq.s32.totalorder %s107_s10, 0 }
  0x16   : > { %s46_s26 = ssub.s32 %s1602_s29, %s44_s11  ;;  %p1631_p9 = por %p151_p7, %p117_p5 }
  0x17   : > { %p48_p10 = scmp.eq.s32.totalorder %s46_s26, 0  ;;  %p156_p11 = scmp.ne.s32.totalorder %s1483_s13, %s1479_s12 }
  0x18   : > { %s1638_s23 = scalar_select %p108_p8, %s1487_s14, %s110_s4  }
  0x19   : > { %s1641_s20 = scalar_select %p48_p10, %s1495_s16, %s50_s28  }
  0x1a   : > { %s1851_s6 = sadd.s32 4294967294, %s1515_s21   ;;  %p1027_p0 = scmp.ge.s32.totalorder %s1515_s21, 4 }
  0x1b   : > { %p157_p12 = scmp.eq.s32.totalorder %s1851_s6, 3 }
  0x1c   : > { %173 = sbr.rel (%p1027_p0) target bundleno = 67 (0x43), region = 16 }
  0x1d   : > { %p1645_p13 = por %p157_p12, %p156_p11 }
  0x21   : > { %176 = sbr.rel (!%p1614_p4) target bundleno = 47 (0x2f), region = 20  ;;  %s178_s22 = sand.u32 (%p1614_p4), 1, %s1495_s16  }
  0x22   : > { %s1259_s7 = sshll.u32 (%p1614_p4), %s1602_s29, 4  ;;  %s1028_s4 = sshll.u32 (%p1614_p4), %s178_s22, 5 }
  0x23   : > { %s1853_s0 = sld [smem:[#allocation10_spill]] (%p1614_p4)  ;;  %s180_s11 = scalar_lea.vmem (%p1614_p4), [#allocation3], %s1028_s4 }
  0x29   : > { %s189_s10 = scalar_lea.vmem %s1853_s0, %s1259_s7 }
  0x2a   : > { %v202_v0 = vld [vmem:[%s189_s10] sm:$0xff]  ;;  %v204_v1 = vld [vmem:[%s189_s10 + $0x8] sm:$0xff] }
  0x2b   : > { %v206_v2 = vld [vmem:[%s189_s10 + $0x20] sm:$0xff]  ;;  %203 = vst [vmem:[%s180_s11] sm:$0xff] %v202_v0  ;;  %v208_v3 = vld [vmem:[%s189_s10 + $0x28] sm:$0xff] }
  0x2c   : > { %205 = vst [vmem:[%s180_s11 + $0x8] sm:$0xff] %v204_v1 }
  0x2d   : > { %207 = vst [vmem:[%s180_s11 + $0x10] sm:$0xff] %v206_v2 }
  0x2e   : > { %209 = vst [vmem:[%s180_s11 + $0x18] sm:$0xff] %v208_v3 }
  0x2f PF: > { %230 = sbr.rel (!%p1624_p6) target bundleno = 67 (0x43), region = 47  ;;  %s232_s29 = sand.u32 (%p1624_p6), 1, %s1487_s14  }
  0x30   : > { %s1260_s5 = sshll.u32 (%p1624_p6), %s1609_s30, 4  ;;  %s1031_s26 = sshll.u32 (%p1624_p6), %s232_s29, 7 }
  0x31   : > { %s1664_s7 = scalar_lea.vmem (%p1624_p6), %s1841_s2, %s1260_s5  ;;  %s234_s30 = scalar_lea.vmem (%p1624_p6), [#allocation4], %s1031_s26 }
  0x32   : > { %v251_v4 = vld [vmem:[%s1664_s7] sm:$0xff] (%p1624_p6)  ;;  %v253_v5 = vld [vmem:[%s1664_s7 + $0x8] sm:$0xff] (%p1624_p6) }
  0x33   : > { %v255_v6 = vld [vmem:[%s1664_s7 + $0x20] sm:$0xff] (%p1624_p6)  ;;  %252 = vst [vmem:[%s234_s30] sm:$0xff] (%p1624_p6), %v251_v4  ;;  %v257_v7 = vld [vmem:[%s1664_s7 + $0x28] sm:$0xff] (%p1624_p6) }
  0x34   : > { %254 = vst [vmem:[%s234_s30 + $0x8] sm:$0xff] %v253_v5  ;;  %v259_v8 = vld [vmem:[%s1664_s7 + $0x40] sm:$0xff]  ;;  %v261_v9 = vld [vmem:[%s1664_s7 + $0x48] sm:$0xff] }
  0x35   : > { %256 = vst [vmem:[%s234_s30 + $0x10] sm:$0xff] %v255_v6  ;;  %v263_v10 = vld [vmem:[%s1664_s7 + $0x60] sm:$0xff]  ;;  %v265_v11 = vld [vmem:[%s1664_s7 + $0x68] sm:$0xff] }
  0x36   : > { %258 = vst [vmem:[%s234_s30 + $0x18] sm:$0xff] %v257_v7  ;;  %v267_v12 = vld [vmem:[%s1664_s7 + $0x80] sm:$0xff]  ;;  %v269_v13 = vld [vmem:[%s1664_s7 + $0x88] sm:$0xff] }
  0x37   : > { %260 = vst [vmem:[%s234_s30 + $0x20] sm:$0xff] %v259_v8  ;;  %v271_v14 = vld [vmem:[%s1664_s7 + $0xa0] sm:$0xff]  ;;  %v273_v15 = vld [vmem:[%s1664_s7 + $0xa8] sm:$0xff] }
  0x38   : > { %262 = vst [vmem:[%s234_s30 + $0x28] sm:$0xff] %v261_v9  ;;  %v275_v16 = vld [vmem:[%s1664_s7 + $0xc0] sm:$0xff]  ;;  %v277_v17 = vld [vmem:[%s1664_s7 + $0xc8] sm:$0xff] }
  0x39   : > { %264 = vst [vmem:[%s234_s30 + $0x30] sm:$0xff] %v263_v10  ;;  %v279_v18 = vld [vmem:[%s1664_s7 + $0xe0] sm:$0xff]  ;;  %v281_v19 = vld [vmem:[%s1664_s7 + $0xe8] sm:$0xff] }
  0x3a   : > { %266 = vst [vmem:[%s234_s30 + $0x38] sm:$0xff] %v265_v11 }
  0x3b   : > { %268 = vst [vmem:[%s234_s30 + $0x40] sm:$0xff] %v267_v12 }
  0x3c   : > { %270 = vst [vmem:[%s234_s30 + $0x48] sm:$0xff] %v269_v13 }
  0x3d   : > { %272 = vst [vmem:[%s234_s30 + $0x50] sm:$0xff] %v271_v14 }
  0x3e   : > { %274 = vst [vmem:[%s234_s30 + $0x58] sm:$0xff] %v273_v15 }
  0x3f   : > { %276 = vst [vmem:[%s234_s30 + $0x60] sm:$0xff] %v275_v16 }
  0x40   : > { %278 = vst [vmem:[%s234_s30 + $0x68] sm:$0xff] %v277_v17 }
  0x41   : > { %280 = vst [vmem:[%s234_s30 + $0x70] sm:$0xff] %v279_v18 }
  0x42   : > { %282 = vst [vmem:[%s234_s30 + $0x78] sm:$0xff] %v281_v19 }
  0x43 PF: > { %p1034_p1 = scmp.ge.s32.totalorder %s1515_s21, 1  ;;  %p287_p2 = scmp.lt.s32.totalorder %s1515_s21, 5 }
  0x45   : > { %p288_p3 = pnand %p1034_p1, %p287_p2 }
  0x46   : > { %s294_s9 = sand.u32 (!%p288_p3), 1, %s1491_s15   ;;  %s1686_s4 = sand.u32 (!%p288_p3), 1, %s1483_s13  }
  0x47   : > { %291 = sbr.rel (%p288_p3) target bundleno = 461 (0x1cd), region = 70  ;;  %s1035_s8 = sshll.u32 (!%p288_p3), %s294_s9, 5 }
  0x48   : > { %s1036_s28 = sshll.u32 (!%p288_p3), %s1686_s4, 7  ;;  %s1037_s10 = sshll.u32 (!%p288_p3), %s1686_s4, 6 }
  0x49   : > { %s341_s11 = ssub.s32 (!%p288_p3), 1, %s1503_s18  ;;  %p359_p4 = scmp.eq.s32.totalorder (!%p288_p3), %s1503_s18, 0 }
  0x4a   : > { %s342_s29 = smul.u32 (!%p288_p3), %s1499_s17, %s341_s11  ;;  %p360_p5 = scmp.eq.s32.totalorder (!%p288_p3), %s1499_s17, 0 }
  0x4b   : > { %s1700_s30 = scalar_lea.vmem (!%p288_p3), [#allocation3], %s1035_s8  ;;  %s1702_s9 = scalar_lea.vmem (!%p288_p3), [#allocation4], %s1036_s28 }
  0x4c   : > { %s343_s5 = sadd.s32 %s1503_s18, %s342_s29  ;;  %p361_p6 = pnand %p360_p5, %p359_p4 }
  0x4d   : > { %s1038_s26 = sshll.u32 %s343_s5, 6  ;;  %s1704_s0 = scalar_lea.vmem [#allocation5], %s1037_s10 }
  0x4e   : > { %p345_p7 = scmp.lt.s32.totalorder %s1038_s26, 127  ;;  %364 = sbr.rel (%p361_p6) target bundleno = 86 (0x56), region = 82 }
  0x50   : > { %s1871_s26 = smov (!%p345_p7, %s1038_s26), 127 }
  0x51   : > { %s1039_s6 = sshll.u32 %s1871_s26, 2 }
  0x52   : > { %s1698_s15 = scalar_lea.vmem %s1840_s1, %s1039_s6 }
  0x53   : > { %vm365_vm0 = vcmask 523264   ;;  %v1517_v20 = vmov 0.0  }
  0x54   : > { %366 = vst.msk [vmem:[#allocation2] sm:$0xff] %vm365_vm0, %v1517_v20 }
  0x55   : > { %367 = vst.msk [vmem:[#allocation2 + $0x8] sm:$0xff] %vm365_vm0, %v1517_v20 }
  0x56 PF: > { %p1040_p8 = scmp.ne.s32.totalorder %s1503_s18, 0 }
  0x58   : > { %370 = sbr.rel (%p1040_p8) target bundleno = 274 (0x112), region = 86 }
  0x5d   : > { %v1272_v21 = vld [vmem:[%s1698_s15 + $0x38] sm:$0xff]  ;;  %v1271_v25 = vld [vmem:[%s1698_s15 + $0x30] sm:$0xff]  ;;  %v1270_v29 = vld [vmem:[%s1698_s15 + $0x28] sm:$0xff]  ;;  %vm711_vm1 = vcmask 523264  }
  0x5e   : > { %v1280_v22 = vld [vmem:[%s1698_s15 + $0x78] sm:$0xff]  ;;  %653 = vmatpush.bf16.msra.mxu0 %v1272_v21  ;;  %v1279_v26 = vld [vmem:[%s1698_s15 + $0x70] sm:$0xff]  ;;  %v1278_v30 = vld [vmem:[%s1698_s15 + $0x68] sm:$0xff] }
  0x5f   : > { %v1288_v23 = vld [vmem:[%s1698_s15 + $0xb8] sm:$0xff]  ;;  %667 = vmatpush.bf16.msra.mxu1 %v1280_v22  ;;  %v1287_v27 = vld [vmem:[%s1698_s15 + $0xb0] sm:$0xff]  ;;  %v1286_v31 = vld [vmem:[%s1698_s15 + $0xa8] sm:$0xff] }
  0x60   : > { %v1296_v24 = vld [vmem:[%s1698_s15 + $0xf8] sm:$0xff]  ;;  %681 = vmatpush.bf16.msra.mxu2 %v1288_v23  ;;  %v1295_v28 = vld [vmem:[%s1698_s15 + $0xf0] sm:$0xff]  ;;  %v1294_v32 = vld [vmem:[%s1698_s15 + $0xe8] sm:$0xff] }
  0x61   : > { %695 = vmatpush.bf16.msra.mxu3 %v1296_v24  ;;  %v1269_v33 = vld [vmem:[%s1698_s15 + $0x20] sm:$0xff]  ;;  %v1268_v37 = vld [vmem:[%s1698_s15 + $0x18] sm:$0xff]  ;;  %v1267_v41 = vld [vmem:[%s1698_s15 + $0x10] sm:$0xff] }
  0x62   : > { %654 = vmatpush.bf16.msra.mxu0 %v1271_v25  ;;  %v1277_v34 = vld [vmem:[%s1698_s15 + $0x60] sm:$0xff]  ;;  %v1276_v38 = vld [vmem:[%s1698_s15 + $0x58] sm:$0xff]  ;;  %v1275_v42 = vld [vmem:[%s1698_s15 + $0x50] sm:$0xff] }
  0x63   : > { %668 = vmatpush.bf16.msra.mxu1 %v1279_v26  ;;  %v1285_v35 = vld [vmem:[%s1698_s15 + $0xa0] sm:$0xff]  ;;  %v1284_v39 = vld [vmem:[%s1698_s15 + $0x98] sm:$0xff]  ;;  %v1283_v43 = vld [vmem:[%s1698_s15 + $0x90] sm:$0xff] }
  0x64   : > { %682 = vmatpush.bf16.msra.mxu2 %v1287_v27  ;;  %v1293_v36 = vld [vmem:[%s1698_s15 + $0xe0] sm:$0xff]  ;;  %v1292_v40 = vld [vmem:[%s1698_s15 + $0xd8] sm:$0xff]  ;;  %v1291_v44 = vld [vmem:[%s1698_s15 + $0xd0] sm:$0xff] }
  0x65   : > { %696 = vmatpush.bf16.msra.mxu3 %v1295_v28  ;;  %v1266_v45 = vld [vmem:[%s1698_s15 + $0x8] sm:$0xff]  ;;  %v1265_v49 = vld [vmem:[%s1698_s15] sm:$0xff]  ;;  %v1043_v53 = vld [vmem:[%s1700_s30] sm:$0xf] }
  0x66   : > { %655 = vmatpush.bf16.msra.mxu0 %v1270_v29  ;;  %v1274_v46 = vld [vmem:[%s1698_s15 + $0x48] sm:$0xff]  ;;  %v1273_v50 = vld [vmem:[%s1698_s15 + $0x40] sm:$0xff]  ;;  %v1261_v55 = vld [vmem:[%s1700_s30 + $0x4] sm:$0xf] }
  0x67   : > { %669 = vmatpush.bf16.msra.mxu1 %v1278_v30  ;;  %v1282_v47 = vld [vmem:[%s1698_s15 + $0x88] sm:$0xff]  ;;  %v1281_v51 = vld [vmem:[%s1698_s15 + $0x80] sm:$0xff]  ;;  %v1051_v57 = vld [vmem:[%s1700_s30 + $0x8] sm:$0xf] }
  0x68   : > { %683 = vmatpush.bf16.msra.mxu2 %v1286_v31  ;;  %v1290_v48 = vld [vmem:[%s1698_s15 + $0xc8] sm:$0xff]  ;;  %v1289_v52 = vld [vmem:[%s1698_s15 + $0xc0] sm:$0xff]  ;;  %v1262_v59 = vld [vmem:[%s1700_s30 + $0xc] sm:$0xf] }
  0x69   : > { %697 = vmatpush.bf16.msra.mxu3 %v1294_v32  ;;  %v1263_v54 = vld [vmem:[%s1700_s30 + $0xc] sm:$0xf0]  ;;  %v1045_v56 = vld [vmem:[%s1700_s30 + $0x10] sm:$0xf0]  ;;  %v1264_v58 = vld [vmem:[%s1700_s30 + $0x14] sm:$0xf0] }
  0x6a   : > { %656 = vmatpush.bf16.msra.mxu0 %v1269_v33  ;;  %v1053_v60 = vld [vmem:[%s1700_s30 + $0x18] sm:$0xf0]  ;;  %v1044_v61 = vor.u32 %v1263_v54, %v1043_v53  ;;  %v1048_v62 = vor.u32 %v1261_v55, %v1045_v56  ;;  %v1052_v63 = vor.u32 %v1264_v58, %v1051_v57  ;;  %v371_v7 = vld [vmem:[#allocation2] sm:$0xff] }
  0x6b   : > { %670 = vmatpush.bf16.msra.mxu1 %v1277_v34  ;;  %v1056_v0 = vor.u32 %v1262_v59, %v1053_v60  ;;  %v372_v15 = vld [vmem:[#allocation2 + $0x8] sm:$0xff] }
  0x6c   : > { %684 = vmatpush.bf16.msra.mxu2 %v1285_v35 }
  0x6d   : > { %698 = vmatpush.bf16.msra.mxu3 %v1293_v36 }
  0x6e   : > { %657 = vmatpush.bf16.msra.mxu0 %v1268_v37 }
  0x6f   : > { %671 = vmatpush.bf16.msra.mxu1 %v1276_v38 }
  0x70   : > { %685 = vmatpush.bf16.msra.mxu2 %v1284_v39 }
  0x71   : > { %699 = vmatpush.bf16.msra.mxu3 %v1292_v40 }
  0x72   : > { %658 = vmatpush.bf16.msra.mxu0 %v1267_v41 }
  0x73   : > { %672 = vmatpush.bf16.msra.mxu1 %v1275_v42 }
  0x74   : > { %686 = vmatpush.bf16.msra.mxu2 %v1283_v43 }
  0x75   : > { %700 = vmatpush.bf16.msra.mxu3 %v1291_v44 }
  0x76   : > { %659 = vmatpush.bf16.msra.mxu0 %v1266_v45 }
  0x77   : > { %673 = vmatpush.bf16.msra.mxu1 %v1274_v46 }
  0x78   : > { %687 = vmatpush.bf16.msra.mxu2 %v1282_v47 }
  0x79   : > { %701 = vmatpush.bf16.msra.mxu3 %v1290_v48 }
  0x7a   : > { %660 = vmatpush.bf16.msra.mxu0 %v1265_v49 }
  0x7b   : > { %674 = vmatpush.bf16.msra.mxu1 %v1273_v50 }
  0x7c   : > { %688 = vmatpush.bf16.msra.mxu2 %v1281_v51 }
  0x7d   : > { %702 = vmatpush.bf16.msra.mxu3 %v1289_v52  ;;  %661 = vmatmul.bf16.vlgmr.msra.gmra.mxu0 %v1044_v61 }
  0x7e   : > { %675 = vmatmul.bf16.vlgmr.msra.gmra.mxu1 %v1048_v62 }
  0x7f   : > { %689 = vmatmul.bf16.vlgmr.msra.gmra.mxu2 %v1052_v63 }
  0x80   : > { %703 = vmatmul.bf16.vlgmr.msra.gmra.mxu3 %v1056_v0 }
  0xfa   : > { %v662_v1 = vpop.f32.mrf.mxu0 }
  0xfb   : > { %v676_v2 = vpop.f32.mrf.mxu1 }
  0xfc   : > { %v677_v3 = vadd.f32 %v676_v2, %v662_v1 }
 0x102   : > { %v690_v4 = vpop.f32.mrf.mxu2  ;;  %v664_v9 = vpop.f32.mrf.mxu0 }
 0x103   : > { %v704_v5 = vpop.f32.mrf.mxu3  ;;  %v691_v6 = vadd.f32 %v690_v4, %v677_v3  ;;  %v678_v10 = vpop.f32.mrf.mxu1 }
 0x104   : > { %v679_v12 = vadd.f32 %v678_v10, %v664_v9 }
 0x105   : > { %v705_v8 = vadd.f32 %v704_v5, %v691_v6 }
 0x107   : > { %v709_v11 = vadd.f32 %v705_v8, %v371_v7 }
 0x109   : > { %712 = vst.msk [vmem:[#allocation2] sm:$0xff] %vm711_vm1, %v709_v11 }
 0x10a   : > { %v692_v13 = vpop.f32.mrf.mxu2 }
 0x10b   : > { %v693_v14 = vadd.f32 %v692_v13, %v679_v12  ;;  %v706_v16 = vpop.f32.mrf.mxu3 }
 0x10d   : > { %v707_v17 = vadd.f32 %v706_v16, %v693_v14 }
 0x10f   : > { %v710_v18 = vadd.f32 %v707_v17, %v372_v15 }
 0x111   : > { %713 = vst.msk [vmem:[#allocation2 + $0x8] sm:$0xff] %vm711_vm1, %v710_v18 }
 0x112 PF: > { %p1185_p10 = scmp.ne.s32.totalorder %s1503_s18, 1 }
 0x114   : > { %717 = sbr.rel (%p1185_p10) target bundleno = 442 (0x1ba), region = 90 }
 0x119   : > { %v1236_v19 = vld [vmem:[%s1702_s9 + $0x60] sm:$0xf]  ;;  %v1311_v20 = vld [vmem:[%s1702_s9 + $0x6c] sm:$0xf0]  ;;  %v1309_v21 = vld [vmem:[%s1702_s9 + $0x64] sm:$0xf] }
 0x11a   : > { %v1237_v22 = vor.u32 %v1311_v20, %v1236_v19  ;;  %v1238_v23 = vld [vmem:[%s1702_s9 + $0x70] sm:$0xf0]  ;;  %v1244_v24 = vld [vmem:[%s1702_s9 + $0x68] sm:$0xf]  ;;  %v1312_v25 = vld [vmem:[%s1702_s9 + $0x74] sm:$0xf0] }
 0x11b   : > { %v1241_v26 = vor.u32 %v1309_v21, %v1238_v23  ;;  %v1245_v27 = vor.u32 %v1312_v25, %v1244_v24  ;;  %v1310_v28 = vld [vmem:[%s1702_s9 + $0x6c] sm:$0xf]  ;;  %v1246_v29 = vld [vmem:[%s1702_s9 + $0x78] sm:$0xf0]  ;;  %v1220_v30 = vld [vmem:[%s1702_s9 + $0x40] sm:$0xf] }
 0x11c   : > { %825 = vmatpush.bf16.msra.mxu0 %v1237_v22  ;;  %v1249_v31 = vor.u32 %v1310_v28, %v1246_v29  ;;  %v1307_v32 = vld [vmem:[%s1702_s9 + $0x4c] sm:$0xf0]  ;;  %v1305_v33 = vld [vmem:[%s1702_s9 + $0x44] sm:$0xf]  ;;  %v1222_v34 = vld [vmem:[%s1702_s9 + $0x50] sm:$0xf0] }
 0x11d   : > { %839 = vmatpush.bf16.msra.mxu1 %v1241_v26  ;;  %853 = vmatpush.bf16.msra.mxu2 %v1245_v27  ;;  %v1221_v35 = vor.u32 %v1307_v32, %v1220_v30  ;;  %v1225_v36 = vor.u32 %v1305_v33, %v1222_v34  ;;  %v1228_v37 = vld [vmem:[%s1702_s9 + $0x48] sm:$0xf]  ;;  %v1308_v38 = vld [vmem:[%s1702_s9 + $0x54] sm:$0xf0]  ;;  %v1306_v39 = vld [vmem:[%s1702_s9 + $0x4c] sm:$0xf] }
 0x11e   : > { %867 = vmatpush.bf16.msra.mxu3 %v1249_v31  ;;  %v1229_v40 = vor.u32 %v1308_v38, %v1228_v37  ;;  %v1230_v41 = vld [vmem:[%s1702_s9 + $0x58] sm:$0xf0]  ;;  %v1204_v42 = vld [vmem:[%s1702_s9 + $0x20] sm:$0xf]  ;;  %v1303_v43 = vld [vmem:[%s1702_s9 + $0x2c] sm:$0xf0] }
 0x11f   : > { %v1233_v44 = vor.u32 %v1306_v39, %v1230_v41  ;;  %v1301_v45 = vld [vmem:[%s1702_s9 + $0x24] sm:$0xf]  ;;  %v1206_v46 = vld [vmem:[%s1702_s9 + $0x30] sm:$0xf0]  ;;  %v1212_v47 = vld [vmem:[%s1702_s9 + $0x28] sm:$0xf]  ;;  %v1205_v48 = vor.u32 %v1303_v43, %v1204_v42 }
 0x120   : > { %826 = vmatpush.bf16.msra.mxu0 %v1221_v35  ;;  %v1304_v49 = vld [vmem:[%s1702_s9 + $0x34] sm:$0xf0]  ;;  %v1302_v50 = vld [vmem:[%s1702_s9 + $0x2c] sm:$0xf]  ;;  %v1214_v51 = vld [vmem:[%s1702_s9 + $0x38] sm:$0xf0]  ;;  %v1209_v52 = vor.u32 %v1301_v45, %v1206_v46 }
 0x121   : > { %840 = vmatpush.bf16.msra.mxu1 %v1225_v36  ;;  %854 = vmatpush.bf16.msra.mxu2 %v1229_v40  ;;  %v1213_v53 = vor.u32 %v1304_v49, %v1212_v47  ;;  %v1188_v54 = vld [vmem:[%s1702_s9] sm:$0xf]  ;;  %v1299_v55 = vld [vmem:[%s1702_s9 + $0xc] sm:$0xf0]  ;;  %v1297_v56 = vld [vmem:[%s1702_s9 + $0x4] sm:$0xf]  ;;  %v1217_v57 = vor.u32 %v1302_v50, %v1214_v51 }
 0x122   : > { %868 = vmatpush.bf16.msra.mxu3 %v1233_v44  ;;  %v1190_v58 = vld [vmem:[%s1702_s9 + $0x10] sm:$0xf0]  ;;  %v1196_v59 = vld [vmem:[%s1702_s9 + $0x8] sm:$0xf]  ;;  %v1300_v60 = vld [vmem:[%s1702_s9 + $0x14] sm:$0xf0]  ;;  %v1189_v63 = vor.u32 %v1299_v55, %v1188_v54 }
 0x123   : > { %v1298_v61 = vld [vmem:[%s1702_s9 + $0xc] sm:$0xf]  ;;  %v1198_v62 = vld [vmem:[%s1702_s9 + $0x18] sm:$0xf0]  ;;  %v718_v0 = vld [vmem:[#allocation2] sm:$0xff]  ;;  %v1193_v2 = vor.u32 %v1297_v56, %v1190_v58  ;;  %v1197_v3 = vor.u32 %v1300_v60, %v1196_v59  ;;  %vm817_vm2 = vcmask 523264  }
 0x124   : > { %827 = vmatpush.bf16.msra.mxu0 %v1205_v48  ;;  %v719_v1 = vld [vmem:[#allocation2 + $0x8] sm:$0xff]  ;;  %v1201_v4 = vor.u32 %v1298_v61, %v1198_v62 }
 0x125   : > { %841 = vmatpush.bf16.msra.mxu1 %v1209_v52  ;;  %855 = vmatpush.bf16.msra.mxu2 %v1213_v53  ;;  %v720_v5 = vpack.c.bf16 %v719_v1, %v718_v0 }
 0x126   : > { %869 = vmatpush.bf16.msra.mxu3 %v1217_v57 }
 0x128   : > { %828 = vmatpush.bf16.msra.mxu0 %v1189_v63 }
 0x129   : > { %842 = vmatpush.bf16.msra.mxu1 %v1193_v2  ;;  %856 = vmatpush.bf16.msra.mxu2 %v1197_v3 }
 0x12a   : > { %870 = vmatpush.bf16.msra.mxu3 %v1201_v4 }
 0x12b   : > { %1250 = vmatmul.msk.bf16.vlgmr.msra.gmra.mxu0 %vm817_vm2, %v720_v5 }
 0x12c   : > { %1251 = vmatmul.msk.bf16.vlgmr.msra.gmra.mxu1 %vm817_vm2, %v720_v5  ;;  %1252 = vmatmul.msk.bf16.vlgmr.msra.gmra.mxu2 %vm817_vm2, %v720_v5 }
 0x12d   : > { %1253 = vmatmul.msk.bf16.vlgmr.msra.gmra.mxu3 %vm817_vm2, %v720_v5 }
 0x1a8   : > { %v830_v6 = vpop.f32.mrf.mxu0 }
 0x1a9   : > { %877 = vst [vmem:[%s1704_s0] sm:$0xff] %v830_v6  ;;  %v844_v7 = vpop.f32.mrf.mxu1 }
 0x1aa   : > { %878 = vst [vmem:[%s1704_s0 + $0x8] sm:$0xff] %v844_v7 }
 0x1af   : > { %v858_v8 = vpop.f32.mrf.mxu2 }
 0x1b0   : > { %879 = vst [vmem:[%s1704_s0 + $0x10] sm:$0xff] %v858_v8  ;;  %v872_v9 = vpop.f32.mrf.mxu3  ;;  %v832_v10 = vpop.f32.mrf.mxu0 }
 0x1b1   : > { %880 = vst [vmem:[%s1704_s0 + $0x18] sm:$0xff] %v872_v9  ;;  %v846_v11 = vpop.f32.mrf.mxu1 }
 0x1b2   : > { %881 = vst [vmem:[%s1704_s0 + $0x20] sm:$0xff] %v832_v10 }
 0x1b3   : > { %882 = vst [vmem:[%s1704_s0 + $0x28] sm:$0xff] %v846_v11 }
 0x1b7   : > { %v860_v12 = vpop.f32.mrf.mxu2 }
 0x1b8   : > { %883 = vst [vmem:[%s1704_s0 + $0x30] sm:$0xff] %v860_v12  ;;  %v874_v13 = vpop.f32.mrf.mxu3 }
 0x1b9   : > { %884 = vst [vmem:[%s1704_s0 + $0x38] sm:$0xff] %v874_v13 }
 0x1ba PF: > { %s893_s8 = smul.u32 %s1499_s17, %s1503_s18  ;;  %s902_s28 = sshll.u32 %s1704_s0, 4  ;;  %s903_s28 = int_to_ptr.vmem [resolvable:$true] %s902_s28 }
 0x1bb   : > { %s886_s6 = scalar_lea.sflag [#allocation6], %s1686_s4  ;;  %s1425_s0 = scalar_lea.hbm %s1842_s3, 128 }
 0x1bc   : > { %s1313_s10 = sshll.u32 %s893_s8, 5 }
 0x1bd   : > { %s901_s5 = scalar_lea.hbm %s1842_s3, %s1313_s10 }
 0x1be   : > { %s904_s26 = sshll.u32 %s901_s5, 4  ;;  %s905_s26 = int_to_ptr.hbm [resolvable:$true] %s904_s26 }
 0x1bf   : > { %s1419_s22 = sshra.s32 %s905_s26, 4  ;;  %s1420_s22 = int_to_ptr.hbm [resolvable:$true] %s1419_s22 }
 0x1c0   : > { %s1421_s7 = scalar_lea.hbm %s1420_s22, 64  ;;  %p1426_p1 = scmp.lt.s32.totalorder %s1420_s22, %s1842_s3 }
 0x1c1   : > { %p1422_p11 = scmp.ne.s32.totalorder %s1420_s22, %s1421_s7  ;;  %p1427_p2 = scmp.lt.s32.totalorder %s1425_s0, %s1421_s7 }
 0x1c3   : > { %p1423_p12 = pnand %p1422_p11, %p1631_p9  ;;  %p1428_p3 = por %p1427_p2, %p1426_p1 }
 0x1c5   : > { %p1424_p0 = pneg %p1423_p12 }
 0x1c7   : > { %p1429_p4 = pnand %p1428_p3, %p1424_p0 }
 0x1c9   : > { %1432 = shalt.err (!%p1429_p4)
}
 0x1ca   : > { %s1518_s4 = smov 512   ;;  %s1519_s9 = smov 1024  }
 0x1cb   : > { %s1520_s8 = smov 32  }
 0x1cc   : > { %1314 = dma.vmem_to_hbm [thread:$0]  (%p1631_p9), %s903_s28, 1024, %s905_s26, %s886_s6, %s1518_s4, %s1519_s9, %s1520_s8  }
 0x1cd PF: > { %p1320_p5 = scmp.ge.s32.totalorder %s1515_s21, 2  ;;  %s919_s10 = sand.u32 1, %s1479_s12  }
 0x1ce   : > { %s920_s11 = scalar_lea.sflag [#allocation6], %s919_s10 }
 0x1cf   : > { %p1317_p6 = pnand %p1320_p5, %p1645_p13 }
 0x1d1   : > { %p1318_p7 = pneg %p1317_p6 }
 0x1d3   : > { %1474 = dma.done.wait (%p1318_p7), %s920_s11, 1024  }
 0x1d4   : > { %1476 = vsyncadd (%p1318_p7), %s920_s11, 4294966272  ;;  %s16_s21 = sadd.s32 1, %s1515_s21   ;;  %s1854_s18 = sld [smem:[#allocation8_spill]] }
 0x1d5   : > { %p13_p8 = scmp.ge.s32.totalorder %s16_s21, 6   ;;  %s1855_s27 = sld [smem:[#allocation9_spill]] }
 0x1d6   : > { %s1856_s12 = smov %s1483_s13  ;;  %s1857_s13 = smov %s1487_s14 }
 0x1d7   : > { %s1858_s14 = smov %s1638_s23  ;;  %s1859_s15 = smov %s1495_s16 }
 0x1d8   : > { %s1860_s16 = smov %s1641_s20  ;;  %s1861_s17 = smov %s1507_s19 }
 0x1d9   : > { %s1863_s20 = smov %s1869_s25  ;;  %15 = sbr.rel (!%p13_p8) target bundleno = 8 (0x8), region = 141 }
 0x1db   : > { %s1862_s19 = smov %s1855_s27 }
 0x1de   :  { %926 = vsyncpa [#allocation6], 1 }
 0x1df   :  { %928 = vsyncpa [#allocation6 + $0x1], 1 }

</bundles_post_ra>
